<compile_context>
chip_gen: v7x
topology: tpu7x:2x2x1
jax: 0.10.0
libtpu: 0.0.40
codegen_flags: <defaults>
</compile_context>

<pallas_src>
import functools

import jax
import jax.numpy as jnp
from jax.experimental import pallas as pl
from jax.experimental.pallas import tpu as pltpu

NUM_CLASSES = 10
LANE = 128
SUBLANE = 8


def _round_up(x, m):
    return ((x + m - 1) // m) * m


# ------------------------- fused Pallas kernel -------------------------

def _mixmatch_kernel(lam_ref, idx_ref, allx_ref, ylbl_ref, w_ref, b_ref,
                     logit_ref, my_ref, *, batch, num_classes, inv_t,
                     int_power):
    """Fused MixMatch forward:
         all_logits = all_x @ W + b                (labeled + both unlabeled views)
         p          = avg softmax of the two unlabeled views (rows paired on MXU)
         prob       = sharpen(p)                   (temperature 1/T)
         all_y      = [lbl_y ; prob ; prob ; 0]    (row-index select, in-register)
         mixed_*    = lam * a + (1-lam) * a[perm]  (one-hot permutation gather)
         logits     = mixed_x @ W + b
    """
    n_pad, c_pad = logit_ref.shape
    lam = lam_ref[0]                                   # scalar from SMEM
    one_m = 1.0 - lam

    w = w_ref[...]                                     # (D, 128), reused twice
    b = b_ref[...]                                     # (1, 128)
    all_x = allx_ref[...]                              # (n_pad, D)

    # ---- forward over the whole (labeled + unlabeled) stack at once --------
    all_logits = jnp.dot(all_x, w, preferred_element_type=jnp.float32) + b

    # ---- pseudo-labels: masked row-wise softmax over the valid class lanes -
    lane = jax.lax.broadcasted_iota(jnp.int32, (1, c_pad), 1)
    valid = lane < num_classes                         # zero-padded class lanes
    z = jnp.where(valid, all_logits, jnp.float32(-1e30))
    z = z - jnp.max(z, axis=1, keepdims=True)
    e = jnp.where(valid, jnp.exp(z), jnp.float32(0.0))
    # divide moved to the (nearly free) EUP slot
    p_all = e * pl.reciprocal(jnp.sum(e, axis=1, keepdims=True), approx=True)

    # Pair each unlabeled row with the other augmentation of the same sample
    # (row i in [B,2B) <-> row i+B, row i in [2B,3B) <-> row i-B) via a tiny
    # constant one-hot matmul: cheaper/safer than cross-sublane shuffles.
    r = jax.lax.broadcasted_iota(jnp.int32, (n_pad, n_pad), 0)
    c = jax.lax.broadcasted_iota(jnp.int32, (n_pad, n_pad), 1)
    pair = (((c == r + batch) & (r >= batch) & (r < 2 * batch)) |
            ((c == r - batch) & (r >= 2 * batch) & (r < 3 * batch)))
    partner = jnp.dot(pair.astype(jnp.float32), p_all,
                      preferred_element_type=jnp.float32)
    p = 0.5 * (p_all + partner)

    # Sharpen: p ** (1/T).  For small integer 1/T (T=0.5 -> p*p) use repeated
    # multiplies instead of the exp(log(p)/T) round-trip (2 EUP passes avoided
    # plus the log(0) edge case).
    if int_power is not None:
        pt = p
        for _ in range(int_power - 1):
            pt = pt * p
    else:
        pt = jnp.where(valid,
                       jnp.exp(jnp.log(jnp.maximum(p, 1e-30)) * inv_t),
                       jnp.float32(0.0))
    prob = pt * pl.reciprocal(jnp.sum(pt, axis=1, keepdims=True), approx=True)

    # ---- all_y = [lbl_y ; prob(u1 rows) ; prob(u2 rows) ; 0], in-register ---
    row = jax.lax.broadcasted_iota(jnp.int32, (n_pad, c_pad), 0)
    all_y = jnp.where(row < batch, ylbl_ref[...],
                      jnp.where(row < 3 * batch, prob, jnp.float32(0.0)))

    # ---- mixup with the permutation expressed as a one-hot matrix ----------
    perm = (c == idx_ref[...]).astype(jnp.float32)     # (n_pad, n_pad)
    x_shuf = jnp.dot(perm, all_x, preferred_element_type=jnp.float32)
    y_shuf = jnp.dot(perm, all_y, preferred_element_type=jnp.float32)

    mixed_x = lam * all_x + one_m * x_shuf             # never leaves VMEM
    my_ref[...] = lam * all_y + one_m * y_shuf

    # ---- net forward over the whole mixed batch (linear net) ---------------
    logit_ref[...] = jnp.dot(mixed_x, w,
                             preferred_element_type=jnp.float32) + b


# ------------------------- kernel wrapper -------------------------

def mixmatch_fused(lam, idxes, all_x, y_lbl, w_pad, b_pad, *, batch,
                   num_classes, temperature):
    n_pad, d = all_x.shape
    c_pad = w_pad.shape[1]
    inv_t = 1.0 / float(temperature)
    int_power = int(round(inv_t))
    if not (abs(inv_t - int_power) < 1e-6 and 1 <= int_power <= 8):
        int_power = None
    kern = functools.partial(_mixmatch_kernel, batch=batch,
                             num_classes=num_classes, inv_t=inv_t,
                             int_power=int_power)
    return pl.pallas_call(
        kern,
        out_shape=(jax.ShapeDtypeStruct((n_pad, c_pad), jnp.float32),
                   jax.ShapeDtypeStruct((n_pad, c_pad), jnp.float32)),
        grid=(1,),
        in_specs=[
            pl.BlockSpec(memory_space=pltpu.MemorySpace.SMEM),   # lam (1,)
            pl.BlockSpec((n_pad, 1), lambda i: (0, 0)),          # idxes
            pl.BlockSpec((n_pad, d), lambda i: (0, 0)),          # all_x
            pl.BlockSpec((n_pad, c_pad), lambda i: (0, 0)),      # lbl_y (padded)
            pl.BlockSpec((d, c_pad), lambda i: (0, 0)),          # W
            pl.BlockSpec((1, c_pad), lambda i: (0, 0)),          # b
        ],
        out_specs=(pl.BlockSpec((n_pad, c_pad), lambda i: (0, 0)),
                   pl.BlockSpec((n_pad, c_pad), lambda i: (0, 0))),
    )(lam, idxes, all_x, y_lbl, w_pad, b_pad)


# ------------------------- MixMatch module -------------------------

class MixMatch:
    def __init__(self, num_augments, temperature, alpha):
        self.K = num_augments
        self.T = temperature
        self.alpha = alpha
        # TODO(synk): LinfPGDAttack / kl_div are not defined in the provided
        # module source; the adversarial perturbation of unlbl_x1/unlbl_x2 is
        # skipped and the clean unlabeled inputs are used in their place.

    def forward(self, net_params, unlbl_x1, unlbl_x2, lbl_x, lbl_y, rng):
        w, b = net_params                    # (D, C), (1, C)
        batch_size = unlbl_x1.shape[0]
        flat = lambda x: x.reshape(x.shape[0], -1).astype(jnp.float32)
        u1, u2, lx = flat(unlbl_x1), flat(unlbl_x2), flat(lbl_x)
        c = w.shape[1]
        c_pad = _round_up(max(c, LANE), LANE)
        n_tot = 3 * batch_size
        n_pad = _round_up(n_tot, SUBLANE)

        # TODO(synk): net.update_batch_stats(...) has no equivalent for the
        # synthetic linear net (no batch-norm running statistics).

        # Lane-dense class axis: zero-pad weights / bias / labels to 128 lanes
        # once (plain-JAX glue); everything stays (N, 128) until the final slice.
        w_pad = jnp.pad(w.astype(jnp.float32), ((0, 0), (0, c_pad - c)))
        b_pad = jnp.pad(b.reshape(1, -1).astype(jnp.float32),
                        ((0, 0), (0, c_pad - c)))
        # Labeled one-hot targets, padded on rows (to n_pad) and classes.
        y_lbl = jnp.pad(lbl_y.astype(jnp.float32),
                        ((0, n_pad - batch_size), (0, c_pad - c)))

        # Row-padded [lbl_x ; unlbl_x1 ; unlbl_x2] stack (pad rows are zeros
        # and map to themselves in the permutation; sliced away afterwards).
        all_x = jnp.concatenate([lx, u1, u2], axis=0)
        all_x = jnp.pad(all_x, ((0, n_pad - n_tot), (0, 0)))

        # np.random.beta / torch.randperm -> deterministic JAX PRNG draws
        k_lam, k_perm = jax.random.split(rng)
        lam = jax.random.beta(k_lam, self.alpha, self.alpha)
        lam = jnp.maximum(lam, 1.0 - lam).astype(jnp.float32).reshape(1)
        idxes = jax.random.permutation(k_perm, n_tot).astype(jnp.int32)
        if n_pad != n_tot:
            idxes = jnp.concatenate(
                [idxes, jnp.arange(n_tot, n_pad, dtype=jnp.int32)])
        idxes = idxes.reshape(n_pad, 1)

        # Single fused kernel: forward + pseudo-label + sharpen + mixup + net.
        mixed_logit_pad, mixed_y_pad = mixmatch_fused(
            lam, idxes, all_x, y_lbl, w_pad, b_pad,
            batch=batch_size, num_classes=c, temperature=self.T)

        mixed_logit = mixed_logit_pad[:n_tot, :c]
        mixed_y = mixed_y_pad[:n_tot, :c]
        lbl_logit = mixed_logit[:batch_size]
        unlbl_logit = mixed_logit[batch_size:]
        return (unlbl_logit, mixed_y[batch_size:], lbl_logit,
                mixed_y[:batch_size])


# ------------------------- pure-JAX reference -------------------------

def _reference_forward(w, b, unlbl_x1, unlbl_x2, lbl_x, lbl_y, rng, T, alpha):
    flat = lambda x: x.reshape(x.shape[0], -1).astype(jnp.float32)
    u1, u2, lx = flat(unlbl_x1), flat(unlbl_x2), flat(lbl_x)
    bsz = u1.shape[0]
    l1 = u1 @ w + b
    l2 = u2 @ w + b
    p = 0.5 * (jax.nn.softmax(l1, axis=1) + jax.nn.softmax(l2, axis=1))
    pt = p ** (1.0 / T)
    prob = pt / pt.sum(axis=1, keepdims=True)
    all_x = jnp.concatenate([lx, u1, u2], axis=0)
    all_y = jnp.concatenate([lbl_y, prob, prob], axis=0)
    k_lam, k_perm = jax.random.split(rng)            # same draws as forward()
    lam = jax.random.beta(k_lam, alpha, alpha)
    lam = jnp.maximum(lam, 1.0 - lam).astype(jnp.float32)
    idxes = jax.random.permutation(k_perm, all_x.shape[0]).astype(jnp.int32)
    mixed_x = lam * all_x + (1.0 - lam) * all_x[idxes]
    mixed_y = lam * all_y + (1.0 - lam) * all_y[idxes]
    logit = mixed_x @ w + b
    return logit[bsz:], mixed_y[bsz:], logit[:bsz], mixed_y[:bsz]


# ------------------------- driver -------------------------

if __name__ == "__main__":
    key = jax.random.PRNGKey(0)
    B, C, H, W_ = 2, 1, 16, 16          # small MNIST-like images
    D = C * H * W_

    kx1, kx2, klx, kly, kw, krun = jax.random.split(key, 6)
    unlbl_x1 = jax.random.uniform(kx1, (B, C, H, W_), jnp.float32)
    unlbl_x2 = jax.random.uniform(kx2, (B, C, H, W_), jnp.float32)
    lbl_x = jax.random.uniform(klx, (B, C, H, W_), jnp.float32)
    labels = jax.random.randint(kly, (B,), 0, NUM_CLASSES)
    lbl_y = jax.nn.one_hot(labels, NUM_CLASSES, dtype=jnp.float32)

    # deterministic synthetic net parameters (linear classifier D -> 10)
    w = (0.02 * jax.random.normal(kw, (D, NUM_CLASSES))).astype(jnp.float32)
    b = jnp.zeros((1, NUM_CLASSES), jnp.float32)

    mm = MixMatch(num_augments=2, temperature=0.5, alpha=0.75)
    outs = mm.forward((w, b), unlbl_x1, unlbl_x2, lbl_x, lbl_y, krun)
    outs = jax.block_until_ready(outs)

    unlbl_logit, unlbl_tgt, lbl_logit, lbl_tgt = outs
    assert unlbl_logit.shape == (2 * B, NUM_CLASSES)
    assert unlbl_tgt.shape == (2 * B, NUM_CLASSES)
    assert lbl_logit.shape == (B, NUM_CLASSES)
    assert lbl_tgt.shape == (B, NUM_CLASSES)

    # numerical check against the pure-JAX reference (loose tolerance: the
    # kernel uses approximate EUP reciprocals and MXU matmuls)
    ref = _reference_forward(w, b, unlbl_x1, unlbl_x2, lbl_x, lbl_y, krun,
                             T=0.5, alpha=0.75)
    for got, want in zip(outs, ref):
        assert bool(jnp.all(jnp.isfinite(got)))
        assert bool(jnp.allclose(got, want, atol=5e-2, rtol=5e-2))

    print("KERNEL_OK")
</pallas_src>

<mosaic_0001>
module attributes {stable_mosaic.version = 11 : i64} {
  func.func @_mixmatch_kernel(%arg0: i32, %arg1: memref<1xf32, #tpu.memory_space<smem>>, %arg2: memref<8x1xi32, #tpu.memory_space<vmem>>, %arg3: memref<8x256xf32, #tpu.memory_space<vmem>>, %arg4: memref<8x128xf32, #tpu.memory_space<vmem>>, %arg5: memref<256x128xf32, #tpu.memory_space<vmem>>, %arg6: memref<1x128xf32, #tpu.memory_space<vmem>>, %arg7: memref<8x128xf32, #tpu.memory_space<vmem>>, %arg8: memref<8x128xf32, #tpu.memory_space<vmem>>) attributes {dimension_semantics = [#tpu.dimension_semantics<arbitrary>], iteration_bounds = array<i64: 1>, scalar_prefetch = 0 : i64, scratch_operands = 0 : i64, tpu.core_type = #tpu.core_type<tc>, window_params = [{transform_indices = @transform_0, window_bounds = array<i64: 1>}, {pipeline_mode = #tpu.pipeline_mode<synchronous>, transform_indices = @transform_1, window_bounds = array<i64: 8, 1>}, {pipeline_mode = #tpu.pipeline_mode<synchronous>, transform_indices = @transform_2, window_bounds = array<i64: 8, 256>}, {pipeline_mode = #tpu.pipeline_mode<synchronous>, transform_indices = @transform_3, window_bounds = array<i64: 8, 128>}, {pipeline_mode = #tpu.pipeline_mode<synchronous>, transform_indices = @transform_4, window_bounds = array<i64: 256, 128>}, {pipeline_mode = #tpu.pipeline_mode<synchronous>, transform_indices = @transform_5, window_bounds = array<i64: 1, 128>}, {pipeline_mode = #tpu.pipeline_mode<synchronous>, transform_indices = @transform_6, window_bounds = array<i64: 8, 128>}, {pipeline_mode = #tpu.pipeline_mode<synchronous>, transform_indices = @transform_7, window_bounds = array<i64: 8, 128>}]} {
    %c0 = arith.constant 0 : index
    %0 = memref.load %arg1[%c0] : memref<1xf32, #tpu.memory_space<smem>>
    %cst = arith.constant 1.000000e+00 : f32
    %1 = arith.subf %cst, %0 : f32
    %c0_0 = arith.constant 0 : index
    %c0_1 = arith.constant 0 : index
    %2 = vector.load %arg5[%c0_0, %c0_1] : memref<256x128xf32, #tpu.memory_space<vmem>>, vector<256x128xf32>
    %c0_2 = arith.constant 0 : index
    %c0_3 = arith.constant 0 : index
    %3 = vector.load %arg6[%c0_2, %c0_3] : memref<1x128xf32, #tpu.memory_space<vmem>>, vector<1x128xf32>
    %c0_4 = arith.constant 0 : index
    %c0_5 = arith.constant 0 : index
    %4 = vector.load %arg3[%c0_4, %c0_5] : memref<8x256xf32, #tpu.memory_space<vmem>>, vector<8x256xf32>
    %cst_6 = arith.constant dense<0.000000e+00> : vector<8x128xf32>
    %5 = tpu.matmul %4, %2, %cst_6 {dimension_numbers = #tpu.dot_dimension_numbers<[1], [0], [0], [1], [0, 0, 1, 1], [], []>} : vector<8x256xf32>, vector<256x128xf32>, vector<8x128xf32> -> vector<8x128xf32>
    %6 = vector.broadcast %3 : vector<1x128xf32> to vector<8x128xf32>
    %7 = arith.addf %5, %6 : vector<8x128xf32>
    %8 = tpu.iota {dimensions = array<i32: 1>} : vector<1x128xi32>
    %c10_i32 = arith.constant 10 : i32
    %9 = vector.broadcast %c10_i32 : i32 to vector<1x128xi32>
    %10 = arith.cmpi slt, %8, %9 : vector<1x128xi32>
    %cst_7 = arith.constant -1.000000e+30 : f32
    %11 = vector.shape_cast %10 : vector<1x128xi1> to vector<1x128xi1>
    %12 = vector.broadcast %11 : vector<1x128xi1> to vector<8x128xi1>
    %13 = vector.broadcast %cst_7 : f32 to vector<8x128xf32>
    %14 = arith.select %12, %7, %13 : vector<8x128xi1>, vector<8x128xf32>
    %cst_8 = arith.constant dense<0xFF800000> : vector<8xf32>
    %15 = vector.multi_reduction <maximumf>, %14, %cst_8 [1] : vector<8x128xf32> to vector<8xf32>
    %16 = vector.shape_cast %15 : vector<8xf32> to vector<8x1xf32>
    %17 = vector.broadcast %16 : vector<8x1xf32> to vector<8x128xf32>
    %18 = arith.subf %14, %17 : vector<8x128xf32>
    %19 = math.exp %18 : vector<8x128xf32>
    %cst_9 = arith.constant 0.000000e+00 : f32
    %20 = vector.shape_cast %10 : vector<1x128xi1> to vector<1x128xi1>
    %21 = vector.broadcast %20 : vector<1x128xi1> to vector<8x128xi1>
    %22 = vector.broadcast %cst_9 : f32 to vector<8x128xf32>
    %23 = arith.select %21, %19, %22 : vector<8x128xi1>, vector<8x128xf32>
    %cst_10 = arith.constant dense<0.000000e+00> : vector<8xf32>
    %24 = vector.multi_reduction <add>, %23, %cst_10 [1] : vector<8x128xf32> to vector<8xf32>
    %25 = vector.shape_cast %24 : vector<8xf32> to vector<8x1xf32>
    %26 = tpu.reciprocal %25 {approx = true} : vector<8x1xf32> -> vector<8x1xf32>
    %27 = vector.broadcast %26 : vector<8x1xf32> to vector<8x128xf32>
    %28 = arith.mulf %23, %27 : vector<8x128xf32>
    %29 = tpu.iota {dimensions = array<i32: 0>} : vector<8x8xi32>
    %30 = tpu.iota {dimensions = array<i32: 1>} : vector<8x8xi32>
    %c2_i32 = arith.constant 2 : i32
    %31 = vector.broadcast %c2_i32 : i32 to vector<8x8xi32>
    %32 = arith.addi %29, %31 : vector<8x8xi32>
    %33 = arith.cmpi eq, %30, %32 : vector<8x8xi32>
    %c2_i32_11 = arith.constant 2 : i32
    %34 = vector.broadcast %c2_i32_11 : i32 to vector<8x8xi32>
    %35 = arith.cmpi sge, %29, %34 : vector<8x8xi32>
    %36 = arith.andi %33, %35 : vector<8x8xi1>
    %c4_i32 = arith.constant 4 : i32
    %37 = vector.broadcast %c4_i32 : i32 to vector<8x8xi32>
    %38 = arith.cmpi slt, %29, %37 : vector<8x8xi32>
    %39 = arith.andi %36, %38 : vector<8x8xi1>
    %c2_i32_12 = arith.constant 2 : i32
    %40 = vector.broadcast %c2_i32_12 : i32 to vector<8x8xi32>
    %41 = arith.subi %29, %40 : vector<8x8xi32>
    %42 = arith.cmpi eq, %30, %41 : vector<8x8xi32>
    %c4_i32_13 = arith.constant 4 : i32
    %43 = vector.broadcast %c4_i32_13 : i32 to vector<8x8xi32>
    %44 = arith.cmpi sge, %29, %43 : vector<8x8xi32>
    %45 = arith.andi %42, %44 : vector<8x8xi1>
    %c6_i32 = arith.constant 6 : i32
    %46 = vector.broadcast %c6_i32 : i32 to vector<8x8xi32>
    %47 = arith.cmpi slt, %29, %46 : vector<8x8xi32>
    %48 = arith.andi %45, %47 : vector<8x8xi1>
    %49 = arith.ori %39, %48 : vector<8x8xi1>
    %50 = arith.extui %49 : vector<8x8xi1> to vector<8x8xi32>
    %51 = arith.sitofp %50 : vector<8x8xi32> to vector<8x8xf32>
    %cst_14 = arith.constant dense<0.000000e+00> : vector<8x128xf32>
    %52 = tpu.matmul %51, %28, %cst_14 {dimension_numbers = #tpu.dot_dimension_numbers<[1], [0], [0], [1], [0, 0, 1, 1], [], []>} : vector<8x8xf32>, vector<8x128xf32>, vector<8x128xf32> -> vector<8x128xf32>
    %53 = arith.addf %28, %52 : vector<8x128xf32>
    %cst_15 = arith.constant 5.000000e-01 : f32
    %54 = vector.broadcast %cst_15 : f32 to vector<8x128xf32>
    %55 = arith.mulf %54, %53 : vector<8x128xf32>
    %56 = arith.mulf %55, %55 : vector<8x128xf32>
    %cst_16 = arith.constant dense<0.000000e+00> : vector<8xf32>
    %57 = vector.multi_reduction <add>, %56, %cst_16 [1] : vector<8x128xf32> to vector<8xf32>
    %58 = vector.shape_cast %57 : vector<8xf32> to vector<8x1xf32>
    %59 = tpu.reciprocal %58 {approx = true} : vector<8x1xf32> -> vector<8x1xf32>
    %60 = vector.broadcast %59 : vector<8x1xf32> to vector<8x128xf32>
    %61 = arith.mulf %56, %60 : vector<8x128xf32>
    %62 = tpu.iota {dimensions = array<i32: 0>} : vector<8x128xi32>
    %c2_i32_17 = arith.constant 2 : i32
    %63 = vector.broadcast %c2_i32_17 : i32 to vector<8x128xi32>
    %64 = arith.cmpi slt, %62, %63 : vector<8x128xi32>
    %c0_18 = arith.constant 0 : index
    %c0_19 = arith.constant 0 : index
    %65 = vector.load %arg4[%c0_18, %c0_19] : memref<8x128xf32, #tpu.memory_space<vmem>>, vector<8x128xf32>
    %c6_i32_20 = arith.constant 6 : i32
    %66 = vector.broadcast %c6_i32_20 : i32 to vector<8x128xi32>
    %67 = arith.cmpi slt, %62, %66 : vector<8x128xi32>
    %cst_21 = arith.constant 0.000000e+00 : f32
    %68 = vector.broadcast %cst_21 : f32 to vector<8x128xf32>
    %69 = arith.select %67, %61, %68 : vector<8x128xi1>, vector<8x128xf32>
    %70 = arith.select %64, %65, %69 : vector<8x128xi1>, vector<8x128xf32>
    %c0_22 = arith.constant 0 : index
    %c0_23 = arith.constant 0 : index
    %71 = vector.load %arg2[%c0_22, %c0_23] : memref<8x1xi32, #tpu.memory_space<vmem>>, vector<8x1xi32>
    %72 = vector.broadcast %71 : vector<8x1xi32> to vector<8x8xi32>
    %73 = arith.cmpi eq, %30, %72 : vector<8x8xi32>
    %74 = arith.extui %73 : vector<8x8xi1> to vector<8x8xi32>
    %75 = arith.sitofp %74 : vector<8x8xi32> to vector<8x8xf32>
    %cst_24 = arith.constant dense<0.000000e+00> : vector<8x256xf32>
    %76 = tpu.matmul %75, %4, %cst_24 {dimension_numbers = #tpu.dot_dimension_numbers<[1], [0], [0], [1], [0, 0, 1, 1], [], []>} : vector<8x8xf32>, vector<8x256xf32>, vector<8x256xf32> -> vector<8x256xf32>
    %cst_25 = arith.constant dense<0.000000e+00> : vector<8x128xf32>
    %77 = tpu.matmul %75, %70, %cst_25 {dimension_numbers = #tpu.dot_dimension_numbers<[1], [0], [0], [1], [0, 0, 1, 1], [], []>} : vector<8x8xf32>, vector<8x128xf32>, vector<8x128xf32> -> vector<8x128xf32>
    %78 = vector.broadcast %0 : f32 to vector<8x256xf32>
    %79 = arith.mulf %78, %4 : vector<8x256xf32>
    %80 = vector.broadcast %1 : f32 to vector<8x256xf32>
    %81 = arith.mulf %80, %76 : vector<8x256xf32>
    %82 = arith.addf %79, %81 : vector<8x256xf32>
    %83 = vector.broadcast %0 : f32 to vector<8x128xf32>
    %84 = arith.mulf %83, %70 : vector<8x128xf32>
    %85 = vector.broadcast %1 : f32 to vector<8x128xf32>
    %86 = arith.mulf %85, %77 : vector<8x128xf32>
    %87 = arith.addf %84, %86 : vector<8x128xf32>
    %c0_26 = arith.constant 0 : index
    %c0_27 = arith.constant 0 : index
    %88 = vector.load %arg8[%c0_26, %c0_27] : memref<8x128xf32, #tpu.memory_space<vmem>>, vector<8x128xf32>
    tpu.vector_store %arg8[%c0_26, %c0_27], %87 {strides = array<i32>} : memref<8x128xf32, #tpu.memory_space<vmem>>, vector<8x128xf32>,
    %cst_28 = arith.constant dense<0.000000e+00> : vector<8x128xf32>
    %89 = tpu.matmul %82, %2, %cst_28 {dimension_numbers = #tpu.dot_dimension_numbers<[1], [0], [0], [1], [0, 0, 1, 1], [], []>} : vector<8x256xf32>, vector<256x128xf32>, vector<8x128xf32> -> vector<8x128xf32>
    %90 = vector.broadcast %3 : vector<1x128xf32> to vector<8x128xf32>
    %91 = arith.addf %89, %90 : vector<8x128xf32>
    %c0_29 = arith.constant 0 : index
    %c0_30 = arith.constant 0 : index
    %92 = vector.load %arg7[%c0_29, %c0_30] : memref<8x128xf32, #tpu.memory_space<vmem>>, vector<8x128xf32>
    tpu.vector_store %arg7[%c0_29, %c0_30], %91 {strides = array<i32>} : memref<8x128xf32, #tpu.memory_space<vmem>>, vector<8x128xf32>,
    return
  }
  func.func @transform_0(%arg0: i32) -> i32 {
    %c0_i32 = arith.constant 0 : i32
    %c0_i32_0 = arith.constant 0 : i32
    return %c0_i32 : i32
  }
  func.func @transform_1(%arg0: i32) -> (i32, i32) {
    %c0_i32 = arith.constant 0 : i32
    %c0_i32_0 = arith.constant 0 : i32
    %c0_i32_1 = arith.constant 0 : i32
    return %c0_i32, %c0_i32_0 : i32, i32
  }
  func.func @transform_2(%arg0: i32) -> (i32, i32) {
    %c0_i32 = arith.constant 0 : i32
    %c0_i32_0 = arith.constant 0 : i32
    %c0_i32_1 = arith.constant 0 : i32
    return %c0_i32, %c0_i32_0 : i32, i32
  }
  func.func @transform_3(%arg0: i32) -> (i32, i32) {
    %c0_i32 = arith.constant 0 : i32
    %c0_i32_0 = arith.constant 0 : i32
    %c0_i32_1 = arith.constant 0 : i32
    return %c0_i32, %c0_i32_0 : i32, i32
  }
  func.func @transform_4(%arg0: i32) -> (i32, i32) {
    %c0_i32 = arith.constant 0 : i32
    %c0_i32_0 = arith.constant 0 : i32
    %c0_i32_1 = arith.constant 0 : i32
    return %c0_i32, %c0_i32_0 : i32, i32
  }
  func.func @transform_5(%arg0: i32) -> (i32, i32) {
    %c0_i32 = arith.constant 0 : i32
    %c0_i32_0 = arith.constant 0 : i32
    %c0_i32_1 = arith.constant 0 : i32
    return %c0_i32, %c0_i32_0 : i32, i32
  }
  func.func @transform_6(%arg0: i32) -> (i32, i32) {
    %c0_i32 = arith.constant 0 : i32
    %c0_i32_0 = arith.constant 0 : i32
    %c0_i32_1 = arith.constant 0 : i32
    return %c0_i32, %c0_i32_0 : i32, i32
  }
  func.func @transform_7(%arg0: i32) -> (i32, i32) {
    %c0_i32 = arith.constant 0 : i32
    %c0_i32_0 = arith.constant 0 : i32
    %c0_i32_1 = arith.constant 0 : i32
    return %c0_i32, %c0_i32_0 : i32, i32
  }
}

</mosaic_0001>

<bundles_post_ra>
// kernel: tpu_custom_call.1
= control target key start
LH: loop header
LB: loop body
LE: loop exit
PB: predicated region body
PF: predicated region fallthrough
CT: control target
= control target key end

     0   :  { %14 = vsyncpa [#allocation4], 0  ;;  %s1024_s0 = inlined_call_operand.<no memory space> [shape: f32[1], index: 0, kind: input, shape index: {}]   ;;  %s1025_s1 = inlined_call_operand.vmem [shape: s32[8,1], index: 1, kind: input, shape index: {}]   ;;  %s1026_s2 = inlined_call_operand.vmem [shape: f32[8,256], index: 2, kind: input, shape index: {}]   ;;  %s1027_s3 = inlined_call_operand.hbm [shape: f32[8,128], index: 3, kind: input, shape index: {}]   ;;  %s1028_s4 = inlined_call_operand.hbm [shape: f32[256,128], index: 4, kind: input, shape index: {}]   ;;  %s1029_s5 = inlined_call_operand.vmem [shape: f32[1,128], index: 5, kind: input, shape index: {}]   ;;  %s1030_s6 = inlined_call_operand.hbm [shape: f32[8,128], index: 6, kind: output, shape index: {0}]   ;;  %s1031_s7 = inlined_call_operand.hbm [shape: f32[8,128], index: 7, kind: output, shape index: {1}]  }
   0x1   :  { %15 = vsyncpa [#allocation7], 0 }
   0x2   :  { %16 = vsyncpa [#allocation5], 0 }
   0x3   :  { %17 = vsyncpa [#allocation10], 0  ;;  %s817_s24 = smov [#allocation3]   ;;  %s818_s26 = smov [#allocation6]  }
   0x4   :  { %s30_s25 = sshll.u32 %s817_s24, 4  ;;  %s39_s27 = sshll.u32 %s818_s26, 4  ;;  %s31_s25 = int_to_ptr.vmem [resolvable:$true] %s30_s25  ;;  %s866_s27 = int_to_ptr.vmem [resolvable:$true] %s39_s27 }
   0x5   :  { %s721_s30 = scalar_lea.hbm %s1027_s3, 128 }
   0x6   :  { %p722_p0 = scmp.ne.s32.totalorder %s1027_s3, %s721_s30  ;;  %p725_p1 = scmp.lt.u32.totalorder %s721_s30, %s1027_s3 }
   0x8   :  { %p727_p2 = pnand %p725_p1, %p722_p0 }
   0xa   :  { %730 = shalt.err (!%p727_p2)
}
   0xb   :  { %s731_s12 = scalar_lea.vmem %s31_s25, 128  ;;  %p736_p4 = scmp.lt.s32.totalorder %s31_s25, %s31_s25 }
   0xc   :  { %p732_p3 = scmp.ne.s32.totalorder %s31_s25, %s731_s12  ;;  %p737_p5 = scmp.lt.s32.totalorder %s731_s12, %s731_s12 }
   0xe   :  { %p738_p6 = por %p737_p5, %p736_p4 }
  0x10   :  { %p739_p7 = pnand %p738_p6, %p732_p3 }
  0x12   :  { %742 = shalt.err (!%p739_p7)
}
  0x13   :  { %33 = dma.hbm_to_vmem [thread:$0]  %s1027_s3, 128, %s31_s25, [#allocation4]  }
  0x14   :  { %s743_s17 = scalar_lea.hbm %s1028_s4, 4096 }
  0x15   :  { %p744_p8 = scmp.ne.s32.totalorder %s1028_s4, %s743_s17  ;;  %p747_p9 = scmp.lt.u32.totalorder %s743_s17, %s1028_s4 }
  0x17   :  { %p749_p10 = pnand %p747_p9, %p744_p8 }
  0x19   :  { %752 = shalt.err (!%p749_p10)
}
  0x1a   :  { %s753_s22 = scalar_lea.vmem %s866_s27, 4096  ;;  %p758_p12 = scmp.lt.s32.totalorder %s866_s27, %s866_s27 }
  0x1b   :  { %p754_p11 = scmp.ne.s32.totalorder %s866_s27, %s753_s22  ;;  %p759_p13 = scmp.lt.s32.totalorder %s753_s22, %s753_s22 }
  0x1d   :  { %p760_p0 = por %p759_p13, %p758_p12 }
  0x1f   :  { %p761_p1 = pnand %p760_p0, %p754_p11 }
  0x21   :  { %764 = shalt.err (!%p761_p1)
}
  0x22   :  { %s819_s3 = smov 128   ;;  %s820_s23 = smov 8  }
  0x23   :  { %45 = dma.hbm_to_vmem [thread:$0]  %s1028_s4, 4096, %s866_s27, [#allocation7], %s819_s3, %s819_s3, %s820_s23  }
  0x24   :  { %809 = dma.done.wait [#allocation4], 128  }
  0x25   :  { %810 = vsyncadd [#allocation4], 4294967168 }
  0x26   :  { %811 = dma.done.wait [#allocation7], 4096  }
  0x27   :  { %812 = vsyncadd [#allocation7], 4294963200  ;;  %v72_v0 = vld [vmem:[#allocation6 + $0x80] sm:$0xff]  ;;  %v73_v1 = vld [vmem:[#allocation6 + $0x88] sm:$0xff]  ;;  %v167_v50 = vlaneseq  ;;  %v821_v63 = vmov 0.0   ;;  %vm822_vm1 = vmmov 0  }
  0x28   :  { %v56_v2 = vld [vmem:[#allocation6] sm:$0xff]  ;;  %v897_v3 = vpack.c.bf16 %v73_v1, %v72_v0  ;;  %v57_v4 = vld [vmem:[#allocation6 + $0x8] sm:$0xff]  ;;  %v74_v5 = vld [vmem:[#allocation6 + $0x90] sm:$0xff]  ;;  %359 = vmatprep.mubr.f32.mxu1 %v821_v63  ;;  %v823_v1 = vmov 0   ;;  %vm200_vm13 = vcmask 64512   ;;  %s55_s11 = ssub.f32 1.0, %s1024_s0 }
  0x29   :  { %v75_v6 = vld [vmem:[#allocation6 + $0x98] sm:$0xff]  ;;  %v899_v7 = vpack.c.bf16 %v57_v4, %v56_v2  ;;  %v58_v9 = vld [vmem:[#allocation6 + $0x10] sm:$0xff]  ;;  %v76_v11 = vld [vmem:[#allocation6 + $0xa0] sm:$0xff]  ;;  %v168_v51 = vand.u32 127, %v167_v50  ;;  %713 = vset.pattern.permute.xlu1 %v823_v1  ;;  %714 = vset.pattern.permute.xlu0 %v823_v1  ;;  %v184_v2 = vshrl.u32 %v167_v50, 7 }
  0x2a   :  { %v901_v8 = vpack.c.bf16 %v75_v6, %v74_v5  ;;  %v59_v10 = vld [vmem:[#allocation6 + $0x18] sm:$0xff]  ;;  %641 = vmatprep.subr.bf16.mxu0 %v897_v3  ;;  %v77_v12 = vld [vmem:[#allocation6 + $0xa8] sm:$0xff]  ;;  %v60_v15 = vld [vmem:[#allocation6 + $0x20] sm:$0xff] }
  0x2b   :  { %643 = vmatpush3.bf16.msra.mxu0 %v899_v7  ;;  %v905_v13 = vpack.c.bf16 %v59_v10, %v58_v9  ;;  %v908_v14 = vpack.c.bf16 %v77_v12, %v76_v11  ;;  %v61_v16 = vld [vmem:[#allocation6 + $0x28] sm:$0xff]  ;;  %v78_v17 = vld [vmem:[#allocation6 + $0xb0] sm:$0xff]  ;;  %v79_v18 = vld [vmem:[#allocation6 + $0xb8] sm:$0xff]  ;;  %vm169_vm0 = vcmp.lt.s32.totalorder %v168_v51, 10  ;;  %v185_v4 = vadd.s32 2, %v184_v2 }
  0x2c   :  { %645 = vmatprep.subr.bf16.mxu0 %v901_v8  ;;  %v911_v19 = vpack.c.bf16 %v61_v16, %v60_v15  ;;  %v914_v20 = vpack.c.bf16 %v79_v18, %v78_v17  ;;  %v62_v21 = vld [vmem:[#allocation6 + $0x30] sm:$0xff]  ;;  %v63_v22 = vld [vmem:[#allocation6 + $0x38] sm:$0xff]  ;;  %v80_v23 = vld [vmem:[#allocation6 + $0xc0] sm:$0xff]  ;;  %v550_v5 = vadd.s32 4294967294, %v184_v2  ;;  %vm187_vm3 = vcmp.ge.s32.totalorder %v184_v2, 2 }
  0x2d   :  { %v81_v24 = vld [vmem:[#allocation6 + $0xc8] sm:$0xff]  ;;  %v919_v25 = vld [vmem:[%s1026_s2 + $0x8] sm:$0xff]  ;;  %v925_v26 = vld [vmem:[%s1026_s2] sm:$0xff]  ;;  %v929_v27 = vpack.c.bf16 %v63_v22, %v62_v21  ;;  %vm186_vm2 = vcmp.eq.s32.totalorder %v168_v51, %v185_v4  ;;  %vm193_vm5 = vcmp.ge.s32.totalorder %v184_v2, 4  ;;  %vm189_vm7 = vcmp.lt.s32.totalorder %v184_v2, 4 }
  0x2e   :  { %161 = vmatprep.mubr.f32.mxu0 %v919_v25  ;;  %295 = vmatprep.subr.mxu1 %v919_v25  ;;  %v933_v28 = vpack.c.bf16 %v81_v24, %v80_v23  ;;  %v64_v29 = vld [vmem:[#allocation6 + $0x40] sm:$0xff]  ;;  %v65_v30 = vld [vmem:[#allocation6 + $0x48] sm:$0xff]  ;;  %v82_v31 = vld [vmem:[#allocation6 + $0xd0] sm:$0xff]  ;;  %vm192_vm4 = vcmp.eq.s32.totalorder %v168_v51, %v550_v5  ;;  %vm195_vm9 = vcmp.lt.s32.totalorder %v184_v2, 6  ;;  %v436_v23 = vstv %s1024_s0  ;;  %s824_s0 = smov [#allocation9]  }
  0x2f   :  { %647 = vmatpush3.bf16.msra.mxu0 %v905_v13  ;;  %296 = vmatpush1.msra.mxu1 %v925_v26  ;;  %v83_v32 = vld [vmem:[#allocation6 + $0xd8] sm:$0xff]  ;;  %v936_v33 = vpack.c.bf16 %v65_v30, %v64_v29  ;;  %v66_v35 = vld [vmem:[#allocation6 + $0x50] sm:$0xff]  ;;  %v84_v37 = vld [vmem:[#allocation6 + $0xe0] sm:$0xff]  ;;  %v437_v29 = vmul.f32 %v436_v23, %v925_v26  ;;  %v438_v30 = vmul.f32 %v436_v23, %v919_v25  ;;  %vm281_vm15 = vcmp.lt.s32.totalorder %v184_v2, 2  ;;  %s535_s12 = sshll.u32 %s824_s0, 4  ;;  %s536_s12 = int_to_ptr.vmem [resolvable:$true] %s535_s12 }
  0x30   :  { %649 = vmatprep.subr.bf16.mxu0 %v908_v14  ;;  %v939_v34 = vpack.c.bf16 %v83_v32, %v82_v31  ;;  %v67_v36 = vld [vmem:[#allocation6 + $0x58] sm:$0xff]  ;;  %v85_v38 = vld [vmem:[#allocation6 + $0xe8] sm:$0xff]  ;;  %v68_v41 = vld [vmem:[#allocation6 + $0x60] sm:$0xff]  ;;  %635 = vmatprep.subr.mxu1 %v821_v63  ;;  %v439_v31 = vstv %s55_s11  ;;  %s765_s13 = scalar_lea.vmem %s536_s12, 128  ;;  %p770_p3 = scmp.lt.s32.totalorder %s536_s12, %s536_s12 }
  0x31   :  { %v942_v39 = vpack.c.bf16 %v67_v36, %v66_v35  ;;  %v945_v40 = vpack.c.bf16 %v85_v38, %v84_v37  ;;  %v69_v42 = vld [vmem:[#allocation6 + $0x68] sm:$0xff]  ;;  %v86_v43 = vld [vmem:[#allocation6 + $0xf0] sm:$0xff]  ;;  %v87_v44 = vld [vmem:[#allocation6 + $0xf8] sm:$0xff]  ;;  %p766_p2 = scmp.ne.s32.totalorder %s536_s12, %s765_s13  ;;  %p771_p4 = scmp.lt.s32.totalorder %s765_s13, %s765_s13 }
  0x32   :  { %v948_v45 = vpack.c.bf16 %v69_v42, %v68_v41  ;;  %v951_v46 = vpack.c.bf16 %v87_v44, %v86_v43  ;;  %v70_v47 = vld [vmem:[#allocation6 + $0x70] sm:$0xff]  ;;  %v71_v48 = vld [vmem:[#allocation6 + $0x78] sm:$0xff]  ;;  %vm188_vm6 = vmand %vm186_vm2, %vm187_vm3 }
  0x33   :  { %651 = vmatpush3.bf16.msra.mxu0 %v911_v19  ;;  %v954_v49 = vpack.c.bf16 %v71_v48, %v70_v47  ;;  %v962_v54 = vld [vmem:[%s1029_s5] ss:$0 sm:$0xff]  ;;  %vm194_vm8 = vmand %vm192_vm4, %vm193_vm5  ;;  %p772_p5 = por %p771_p4, %p770_p3 }
  0x34   :  { %653 = vmatprep.subr.bf16.mxu0 %v914_v20  ;;  %v285_v0 = vld [vmem:[%s1025_s1] sm:$0xff]  ;;  %vm190_vm10 = vmand %vm188_vm6, %vm189_vm7 }
  0x35   :  { %287 = vperm.xlu1 %713, %v285_v0   ;;  %vm196_vm11 = vmand %vm194_vm8, %vm195_vm9  ;;  %v282_v44 = vld [vmem:[#allocation3] sm:$0xff]  ;;  %p773_p6 = pnand %p772_p5, %p766_p2 }
  0x36   :  { %vm197_vm12 = vmor %vm190_vm10, %vm196_vm11 }
  0x37   :  { %655 = vmatpush3.bf16.msra.mxu0 %v929_v27  ;;  %v551_v11 = vsel %vm197_vm12, 1.0, %v821_v63 }
  0x38   :  { %657 = vmatprep.subr.bf16.mxu0 %v933_v28 }
  0x3b   :  { %659 = vmatpush3.bf16.msra.mxu0 %v936_v33 }
  0x3c   :  { %661 = vmatprep.subr.bf16.mxu0 %v939_v34 }
  0x3f   :  { %663 = vmatpush3.bf16.msra.mxu0 %v942_v39 }
  0x40   :  { %665 = vmatprep.subr.bf16.mxu0 %v945_v40 }
  0x43   :  { %667 = vmatpush3.bf16.msra.mxu0 %v948_v45 }
  0x44   :  { %669 = vmatprep.subr.bf16.mxu0 %v951_v46 }
  0x47   :  { %671 = vmatpush3.bf16.msra.mxu0 %v954_v49 }
  0x48   :  { %630 = vmatprep.subr.mxu0 %v821_v63 }
  0x4a   :  { %162 = vmatmul.mubr.f32.vlgmr.msra.gmra.mrb[0].mxu0 %v925_v26 }
  0x4b   :  { %632 = vmatprep.mubr.msk.f32.mxu0 %vm822_vm1, %v821_v63 }
  0xb4   :  { %v288_v12 = vpop.permute.xlu1 %287 }
  0xb5   :  { %vm289_vm14 = vcmp.eq.s32.totalorder %v168_v51, %v288_v12 }
  0xb6   :  { %v553_v15 = vsel %vm289_vm14, 1.0, %v821_v63 }
  0xb7   :  { %554 = vmatmul.mubr.msk.f32.vlgmr.msra.gmra.mrb[0].mxu1 %vm200_vm13, %v553_v15 }
  0xb8   :  { %637 = vmatprep.mubr.msk.f32.mxu1 %vm822_vm1, %v821_v63 }
 0x11d   :  { %v588_v52 = vpop.f32.mrb[0].mxu0 }
 0x11e   :  { %v589_v53 = vpop.f32.mrb[1].mxu0 }
 0x11f   :  { %v590_v55 = vadd.f32 %v589_v53, %v588_v52 }
 0x121   :  { %v164_v56 = vadd.f32 %v590_v55, %v962_v54 }
 0x123   :  { %v172_v57 = vsel %vm169_vm0, %v164_v56, -1e+30 }
 0x124   :  { %173 = vmax.xlane.f32.xlu0 %v172_v57 }
 0x18a   :  { %v361_v24 = vpop.f32.mrb[0].mxu1 }
 0x18b   :  { %v440_v32 = vmul.f32 %v439_v31, %v361_v24  ;;  %v363_v35 = vpop.f32.mrb[1].mxu1 }
 0x18c   :  { %v441_v36 = vmul.f32 %v439_v31, %v363_v35 }
 0x18d   :  { %v442_v37 = vadd.f32 %v440_v32, %v437_v29 }
 0x18e   :  { %v443_v38 = vadd.f32 %v441_v36, %v438_v30 }
 0x1b1   :  { %v174_v58 = vpop.xlane.xlu0 %173 }
 0x1b2   :  { %v175_v59 = vsub.f32 %v172_v57, %v174_v58 }
 0x1b4   :  { %v176_v60 = vmul.f32 1.442695, %v175_v59 }
 0x1b6   :  { %715 = vpow2.f32 %v176_v60 }
 0x1c0   :  { %v716_v61 = vpop.eup %715 }
 0x1c1   :  { %v178_v62 = vsel %vm169_vm0, %v716_v61, 0.0 }
 0x1c2   :  { %179 = vadd.xlane.f32.xlu0 %v178_v62 }
 0x24f   :  { %v180_v6 = vpop.xlane.xlu0 %179 }
 0x250   :  { %717 = vrcp.f32 %v180_v6 }
 0x25a   :  { %v718_v9 = vpop.eup %717 }
 0x25b   :  { %v182_v10 = vmul.f32 %v718_v9, %v178_v62 }
 0x25d   :  { %631 = vmatpush3.msra.mxu0 %v182_v10 }
 0x25e   :  { %633 = vmatmul.mubr.msk.f32.vlgmr.msra.gmra.mrb[2].mxu0 %vm200_vm13, %v551_v11 }
 0x331   :  { %v270_v16 = vpop.f32.mrb[2].mxu0 }
 0x332   :  { %v274_v17 = vadd.f32 %v270_v16, %v182_v10  ;;  %v634_v18 = vpop.f32.mrb[3].mxu0 }
 0x334   :  { %v275_v21 = vmul.f32 0.5, %v274_v17 }
 0x336   :  { %v276_v22 = vmul.f32 %v275_v21, %v275_v21 }
 0x338   :  { %277 = vadd.xlane.f32.xlu1 %v276_v22 }
 0x3c5   :  { %v278_v41 = vpop.xlane.xlu1 %277 }
 0x3c6   :  { %719 = vrcp.f32 %v278_v41 }
 0x3d0   :  { %v720_v42 = vpop.eup %719 }
 0x3d1   :  { %v280_v43 = vmul.f32 %v720_v42, %v276_v22 }
 0x3d3   :  { %v283_v47 = vsel %vm195_vm9, %v280_v43, 0.0 }
 0x3d4   :  { %v284_v48 = vsel %vm281_vm15, %v282_v44, %v283_v47 }
 0x3d5   :  { %636 = vmatpush3.msra.mxu1 %v284_v48 }
 0x3d6   :  { %638 = vmatmul.mubr.msk.f32.vlgmr.msra.gmra.mrb[2].mxu1 %vm200_vm13, %v553_v15  ;;  %673 = vmatprep.subr.bf16.mxu1 %v897_v3 }
 0x3d7   :  { %675 = vmatpush3.bf16.msra.mxu1 %v899_v7  ;;  %512 = vmatprep.mubr.f32.mxu1 %v443_v38  ;;  %v444_v7 = vmul.f32 %v436_v23, %v284_v48 }
 0x3d8   :  { %677 = vmatprep.subr.bf16.mxu1 %v901_v8 }
 0x3db   :  { %679 = vmatpush3.bf16.msra.mxu1 %v905_v13 }
 0x3dc   :  { %681 = vmatprep.subr.bf16.mxu1 %v908_v14 }
 0x3df   :  { %683 = vmatpush3.bf16.msra.mxu1 %v911_v19 }
 0x3e0   :  { %685 = vmatprep.subr.bf16.mxu1 %v914_v20 }
 0x3e3   :  { %687 = vmatpush3.bf16.msra.mxu1 %v929_v27 }
 0x3e4   :  { %689 = vmatprep.subr.bf16.mxu1 %v933_v28 }
 0x3e7   :  { %691 = vmatpush3.bf16.msra.mxu1 %v936_v33 }
 0x3e8   :  { %693 = vmatprep.subr.bf16.mxu1 %v939_v34 }
 0x3eb   :  { %695 = vmatpush3.bf16.msra.mxu1 %v942_v39 }
 0x3ec   :  { %697 = vmatprep.subr.bf16.mxu1 %v945_v40 }
 0x3ef   :  { %699 = vmatpush3.bf16.msra.mxu1 %v948_v45 }
 0x3f0   :  { %701 = vmatprep.subr.bf16.mxu1 %v951_v46 }
 0x3f3   :  { %703 = vmatpush3.bf16.msra.mxu1 %v954_v49 }
 0x3f6   :  { %513 = vmatmul.mubr.f32.vlgmr.msra.gmra.mrb[4].mxu1 %v442_v37 }
 0x4a9   :  { %v432_v3 = vpop.f32.mrb[2].mxu1 }
 0x4aa   :  { %v445_v8 = vmul.f32 %v439_v31, %v432_v3  ;;  %v639_v13 = vpop.f32.mrb[3].mxu1 }
 0x4ac   :  { %v446_v14 = vadd.f32 %v445_v8, %v444_v7 }
 0x4ae   :  { %447 = vst [vmem:[#allocation9] sm:$0xff] %v446_v14 }
 0x4af   :  { %776 = shalt.err (!%p773_p6)
}
 0x4b0   :  { %s777_s16 = scalar_lea.hbm %s1031_s7, 128 }
 0x4b1   :  { %p778_p7 = scmp.ne.s32.totalorder %s1031_s7, %s777_s16  ;;  %p781_p8 = scmp.lt.u32.totalorder %s777_s16, %s1031_s7 }
 0x4b3   :  { %p783_p9 = pnand %p781_p8, %p778_p7 }
 0x4b5   :  { %786 = shalt.err (!%p783_p9)
}
 0x4b6   :  { %538 = dma.vmem_to_hbm [thread:$0]  %s536_s12, 128, %s1031_s7, [#allocation10]  }
 0x4b7   :  { %s825_s3 = smov [#allocation8]  }
 0x4b8   :  { %s525_s23 = sshll.u32 %s825_s3, 4  ;;  %s526_s23 = int_to_ptr.vmem [resolvable:$true] %s525_s23 }
 0x4b9   :  { %s787_s24 = scalar_lea.vmem %s526_s23, 128  ;;  %p792_p11 = scmp.lt.s32.totalorder %s526_s23, %s526_s23 }
 0x4ba   :  { %p788_p10 = scmp.ne.s32.totalorder %s526_s23, %s787_s24  ;;  %p793_p12 = scmp.lt.s32.totalorder %s787_s24, %s787_s24 }
 0x4bc   :  { %p794_p13 = por %p793_p12, %p792_p11 }
 0x4be   :  { %p795_p0 = pnand %p794_p13, %p788_p10 }
 0x4c9   :  { %v627_v19 = vpop.f32.mrb[4].mxu1 }
 0x4ca   :  { %v628_v20 = vpop.f32.mrb[5].mxu1 }
 0x4cb   :  { %v629_v25 = vadd.f32 %v628_v20, %v627_v19 }
 0x4cd   :  { %v515_v26 = vadd.f32 %v629_v25, %v962_v54 }
 0x4cf   :  { %518 = vst [vmem:[#allocation8] sm:$0xff] %v515_v26 }
 0x4d0   :  { %798 = shalt.err (!%p795_p0)
}
 0x4d1   :  { %s799_s7 = scalar_lea.hbm %s1030_s6, 128 }
 0x4d2   :  { %p800_p1 = scmp.ne.s32.totalorder %s1030_s6, %s799_s7  ;;  %p803_p2 = scmp.lt.u32.totalorder %s799_s7, %s1030_s6 }
 0x4d4   :  { %p805_p3 = pnand %p803_p2, %p800_p1 }
 0x4d6   :  { %808 = shalt.err (!%p805_p3)
}
 0x4d7   :  { %528 = dma.vmem_to_hbm [thread:$0]  %s526_s23, 128, %s1030_s6, [#allocation5]  }
 0x4d8   :  { %813 = dma.done.wait [#allocation5], 128  }
 0x4d9   :  { %814 = vsyncadd [#allocation5], 4294967168 }
 0x4da   :  { %815 = dma.done.wait [#allocation10], 128  }
 0x4db   :  { %816 = vsyncadd [#allocation10], 4294967168 }
 0x4dc   :  { %545 = vsyncpa [#allocation4], 1 }
 0x4dd   :  { %546 = vsyncpa [#allocation7], 1 }
 0x4de   :  { %547 = vsyncpa [#allocation5], 1 }
 0x4df   :  { %548 = vsyncpa [#allocation10], 1 }

</bundles_post_ra>
